<compile_context>
chip_gen: v5e
topology: v5e:2x2
jax: 0.10.0
libtpu: 0.0.40
codegen_flags: <defaults>
</compile_context>

<pallas_src>
import math
import functools

import jax
import jax.numpy as jnp
from jax.experimental import pallas as pl
from jax.experimental.pallas import tpu as pltpu

# ----------------------------------------------------------------------------
# Small synthetic BERT config (shapes only; weights are random/deterministic).
# ----------------------------------------------------------------------------
VOCAB = 64
MAX_POS = 16
TYPE_VOCAB = 2
HIDDEN = 32
NUM_HEADS = 2
HEAD_DIM = HIDDEN // NUM_HEADS
INTERMEDIATE = 64
NUM_LAYERS = 2
NUM_CLASSES = 3
NUM_CLASSES_PAD = 128          # lane-dense classifier output, sliced in wrapper
LN_EPS = 1e-12

BATCH = 2
SEQ = 8


# ----------------------------------------------------------------------------
# In-kernel helpers (pure f32 elementwise math)
# ----------------------------------------------------------------------------
def _layer_norm(x, gamma, beta):
    mu = jnp.mean(x, axis=-1, keepdims=True)
    xc = x - mu
    var = jnp.mean(xc * xc, axis=-1, keepdims=True)
    return xc * jax.lax.rsqrt(var + LN_EPS) * gamma + beta


def _bf16(x):
    return x.astype(jnp.bfloat16)


# ----------------------------------------------------------------------------
# Kernel 1: LayerNorm over the embedding sum
# ----------------------------------------------------------------------------
def _ln_kernel(x_ref, g_ref, b_ref, o_ref):
    o_ref[...] = _layer_norm(x_ref[...], g_ref[...], b_ref[...]).astype(o_ref.dtype)


def layer_norm(x, gamma, beta):
    N, H = x.shape
    return pl.pallas_call(
        _ln_kernel,
        out_shape=jax.ShapeDtypeStruct((N, H), jnp.float32),
        in_specs=[
            pl.BlockSpec((N, H), lambda: (0, 0)),
            pl.BlockSpec((1, H), lambda: (0, 0)),
            pl.BlockSpec((1, H), lambda: (0, 0)),
        ],
        out_specs=pl.BlockSpec((N, H), lambda: (0, 0)),
    )(x, gamma.reshape(1, H), beta.reshape(1, H))


# ----------------------------------------------------------------------------
# Kernel 2: fully fused BERT encoder layer
#   x -> QKV proj -> per-(b,h) attention -> out proj -> add+LN -> FFN -> add+LN
# ----------------------------------------------------------------------------
def _encoder_layer_kernel(
    x_ref, mask_ref,
    wqkv_ref, bqkv_ref, wo_ref, bo_ref,
    ln1_g_ref, ln1_b_ref,
    w1_ref, b1_ref, w2_ref, b2_ref,
    ln2_g_ref, ln2_b_ref,
    o_ref,
    ctx_ref,                       # VMEM scratch [B*S, H] f32
    *, batch, seq, nheads, head_dim, scale,
):
    H = nheads * head_dim
    x = x_ref[...]                                     # [B*S, H] f32

    # --- fused QKV projection: one MXU pass over x ---------------------------
    qkv = jnp.dot(_bf16(x), wqkv_ref[...],
                  preferred_element_type=jnp.float32) + bqkv_ref[...]   # [B*S, 3H]
    q = qkv[:, 0:H]
    k = qkv[:, H:2 * H]
    v = qkv[:, 2 * H:3 * H]

    # Additive mask bias built in-register from the [B, S] mask.
    neg_bias = (1.0 - mask_ref[...]) * -1e9            # [B, S] f32

    # --- attention: all (batch, head) pairs handled inside this one kernel ---
    for b in range(batch):
        r0 = b * seq
        bias_row = neg_bias[b:b + 1, :]                # [1, S] broadcast over rows
        for h in range(nheads):
            c0 = h * head_dim
            qh = q[r0:r0 + seq, c0:c0 + head_dim]      # [S, Dh]
            kh = k[r0:r0 + seq, c0:c0 + head_dim]
            vh = v[r0:r0 + seq, c0:c0 + head_dim]
            s = jax.lax.dot_general(
                _bf16(qh), _bf16(kh), (((1,), (1,)), ((), ())),
                preferred_element_type=jnp.float32) * scale + bias_row
            m = jnp.max(s, axis=-1, keepdims=True)
            p = jnp.exp(s - m)
            p = p * pl.reciprocal(jnp.sum(p, axis=-1, keepdims=True), approx=True)
            ctx_ref[r0:r0 + seq, c0:c0 + head_dim] = jnp.dot(
                _bf16(p), _bf16(vh), preferred_element_type=jnp.float32)

    ctx = ctx_ref[...]                                 # [B*S, H] f32

    # --- output projection + residual + LayerNorm ----------------------------
    attn_out = jnp.dot(_bf16(ctx), wo_ref[...],
                       preferred_element_type=jnp.float32) + bo_ref[...]
    x1 = _layer_norm(attn_out + x, ln1_g_ref[...], ln1_b_ref[...])

    # --- feed-forward (GELU) + residual + LayerNorm ---------------------------
    # TODO(synk): HF BERT uses exact erf-GELU; tanh-approx GELU used here.
    hid = jnp.dot(_bf16(x1), w1_ref[...],
                  preferred_element_type=jnp.float32) + b1_ref[...]
    hid = jax.nn.gelu(hid, approximate=True)
    ffn = jnp.dot(_bf16(hid), w2_ref[...],
                  preferred_element_type=jnp.float32) + b2_ref[...]
    o_ref[...] = _layer_norm(ffn + x1, ln2_g_ref[...], ln2_b_ref[...]).astype(o_ref.dtype)


def encoder_layer(x, mask_f32, lyr):
    N, H = x.shape
    B, S = mask_f32.shape
    kernel = functools.partial(
        _encoder_layer_kernel,
        batch=B, seq=S, nheads=NUM_HEADS, head_dim=HEAD_DIM,
        scale=1.0 / math.sqrt(HEAD_DIM),
    )
    return pl.pallas_call(
        kernel,
        out_shape=jax.ShapeDtypeStruct((N, H), jnp.float32),
        in_specs=[
            pl.BlockSpec((N, H), lambda: (0, 0)),                 # x
            pl.BlockSpec((B, S), lambda: (0, 0)),                 # attention mask
            pl.BlockSpec((H, 3 * H), lambda: (0, 0)),             # wqkv (bf16)
            pl.BlockSpec((1, 3 * H), lambda: (0, 0)),             # bqkv
            pl.BlockSpec((H, H), lambda: (0, 0)),                 # wo (bf16)
            pl.BlockSpec((1, H), lambda: (0, 0)),                 # bo
            pl.BlockSpec((1, H), lambda: (0, 0)),                 # ln1_g
            pl.BlockSpec((1, H), lambda: (0, 0)),                 # ln1_b
            pl.BlockSpec((H, INTERMEDIATE), lambda: (0, 0)),      # w1 (bf16)
            pl.BlockSpec((1, INTERMEDIATE), lambda: (0, 0)),      # b1
            pl.BlockSpec((INTERMEDIATE, H), lambda: (0, 0)),      # w2 (bf16)
            pl.BlockSpec((1, H), lambda: (0, 0)),                 # b2
            pl.BlockSpec((1, H), lambda: (0, 0)),                 # ln2_g
            pl.BlockSpec((1, H), lambda: (0, 0)),                 # ln2_b
        ],
        out_specs=pl.BlockSpec((N, H), lambda: (0, 0)),
        scratch_shapes=[pltpu.VMEM((N, H), jnp.float32)],
    )(
        x, mask_f32,
        lyr["wqkv"], lyr["bqkv"].reshape(1, 3 * H),
        lyr["wo"], lyr["bo"].reshape(1, H),
        lyr["ln1_g"].reshape(1, H), lyr["ln1_b"].reshape(1, H),
        lyr["w1"], lyr["b1"].reshape(1, INTERMEDIATE),
        lyr["w2"], lyr["b2"].reshape(1, H),
        lyr["ln2_g"].reshape(1, H), lyr["ln2_b"].reshape(1, H),
    )


# ----------------------------------------------------------------------------
# Kernel 3: fused pooler (tanh dense on CLS) + dropout(identity) + classifier
# ----------------------------------------------------------------------------
def _head_kernel(cls_ref, pw_ref, pb_ref, fw_ref, fb_ref, o_ref):
    pooled = jnp.tanh(
        jnp.dot(_bf16(cls_ref[...]), pw_ref[...],
                preferred_element_type=jnp.float32) + pb_ref[...])
    # TODO(synk): dropout(p=0.1) is identity at inference; train-mode dropout not implemented.
    logits = jnp.dot(_bf16(pooled), fw_ref[...],
                     preferred_element_type=jnp.float32) + fb_ref[...]
    o_ref[...] = logits.astype(o_ref.dtype)


def pooler_classifier(cls_tok, pool_w, pool_b, fc_w_pad, fc_b_pad):
    B, H = cls_tok.shape
    P = fc_w_pad.shape[1]
    return pl.pallas_call(
        _head_kernel,
        out_shape=jax.ShapeDtypeStruct((B, P), jnp.float32),
        in_specs=[
            pl.BlockSpec((B, H), lambda: (0, 0)),
            pl.BlockSpec((H, H), lambda: (0, 0)),
            pl.BlockSpec((1, H), lambda: (0, 0)),
            pl.BlockSpec((H, P), lambda: (0, 0)),
            pl.BlockSpec((1, P), lambda: (0, 0)),
        ],
        out_specs=pl.BlockSpec((B, P), lambda: (0, 0)),
    )(cls_tok, pool_w, pool_b.reshape(1, H), fc_w_pad, fc_b_pad.reshape(1, P))


# ----------------------------------------------------------------------------
# Parameter init (deterministic, synthetic).  Matmul weights stored in bf16.
# ----------------------------------------------------------------------------
def init_params(key):
    def nrm(k, shape, std=0.02):
        return (std * jax.random.normal(k, shape)).astype(jnp.float32)

    keys = iter(jax.random.split(key, 64))
    fc_w = nrm(next(keys), (HIDDEN, NUM_CLASSES))
    fc_w_pad = jnp.zeros((HIDDEN, NUM_CLASSES_PAD), jnp.float32).at[:, :NUM_CLASSES].set(fc_w)

    p = {
        "word_emb": nrm(next(keys), (VOCAB, HIDDEN)),
        "pos_emb": nrm(next(keys), (MAX_POS, HIDDEN)),
        "type_emb": nrm(next(keys), (TYPE_VOCAB, HIDDEN)),
        "emb_ln_g": jnp.ones((HIDDEN,), jnp.float32),
        "emb_ln_b": jnp.zeros((HIDDEN,), jnp.float32),
        "layers": [],
        "pool_w": nrm(next(keys), (HIDDEN, HIDDEN)).astype(jnp.bfloat16),
        "pool_b": jnp.zeros((HIDDEN,), jnp.float32),
        "fc_w_pad": fc_w_pad.astype(jnp.bfloat16),
        "fc_b_pad": jnp.zeros((NUM_CLASSES_PAD,), jnp.float32),
    }
    for _ in range(NUM_LAYERS):
        layer = {
            # fused QKV weight [H, 3H] (q | k | v along the output axis)
            "wqkv": nrm(next(keys), (HIDDEN, 3 * HIDDEN)).astype(jnp.bfloat16),
            "bqkv": jnp.zeros((3 * HIDDEN,), jnp.float32),
            "wo": nrm(next(keys), (HIDDEN, HIDDEN)).astype(jnp.bfloat16),
            "bo": jnp.zeros((HIDDEN,), jnp.float32),
            "ln1_g": jnp.ones((HIDDEN,), jnp.float32),
            "ln1_b": jnp.zeros((HIDDEN,), jnp.float32),
            "w1": nrm(next(keys), (HIDDEN, INTERMEDIATE)).astype(jnp.bfloat16),
            "b1": jnp.zeros((INTERMEDIATE,), jnp.float32),
            "w2": nrm(next(keys), (INTERMEDIATE, HIDDEN)).astype(jnp.bfloat16),
            "b2": jnp.zeros((HIDDEN,), jnp.float32),
            "ln2_g": jnp.ones((HIDDEN,), jnp.float32),
            "ln2_b": jnp.zeros((HIDDEN,), jnp.float32),
        }
        p["layers"].append(layer)
    return p


# ----------------------------------------------------------------------------
# Forward pass: BERT encoder -> pooler -> dropout(identity) -> fc
# ----------------------------------------------------------------------------
def bert_classifier_forward(params, input_ids, attention_mask):
    B, S = input_ids.shape
    H = HIDDEN

    # Embeddings (gather is glue; LN runs in-kernel).
    emb = (
        jnp.take(params["word_emb"], input_ids, axis=0)
        + params["pos_emb"][None, :S, :]
        + params["type_emb"][0][None, None, :]
    ).astype(jnp.float32)
    x = emb.reshape(B * S, H)
    x = layer_norm(x, params["emb_ln_g"], params["emb_ln_b"])

    mask_f32 = attention_mask.astype(jnp.float32)        # [B, S]

    for lyr in params["layers"]:
        x = encoder_layer(x, mask_f32, lyr)              # one fused kernel/layer

    # Pooler + dropout(identity) + classifier, fused; output padded to 128 lanes.
    cls_tok = x.reshape(B, S, H)[:, 0, :]                # [B, H]
    logits_pad = pooler_classifier(
        cls_tok, params["pool_w"], params["pool_b"],
        params["fc_w_pad"], params["fc_b_pad"])
    return logits_pad[:, :NUM_CLASSES]


forward_jit = jax.jit(bert_classifier_forward)


# ----------------------------------------------------------------------------
if __name__ == "__main__":
    key = jax.random.PRNGKey(0)
    k_param, k_ids, k_mask = jax.random.split(key, 3)

    params = init_params(k_param)
    input_ids = jax.random.randint(k_ids, (BATCH, SEQ), 0, VOCAB, dtype=jnp.int32)
    # Last two tokens of batch element 1 are padding.
    attention_mask = jnp.ones((BATCH, SEQ), jnp.int32).at[1, -2:].set(0)

    logits = forward_jit(params, input_ids, attention_mask)
    jax.block_until_ready(logits)

    assert logits.shape == (BATCH, NUM_CLASSES)
    assert bool(jnp.all(jnp.isfinite(logits)))
    print("KERNEL_OK")
</pallas_src>

<mosaic_0001>
module attributes {stable_mosaic.version = 11 : i64} {
  func.func @_ln_kernel(%arg0: memref<16x32xf32, #tpu.memory_space<vmem>>, %arg1: memref<1x32xf32, #tpu.memory_space<vmem>>, %arg2: memref<1x32xf32, #tpu.memory_space<vmem>>, %arg3: memref<16x32xf32, #tpu.memory_space<vmem>>) attributes {dimension_semantics = [], scalar_prefetch = 0 : i64, scratch_operands = 0 : i64, tpu.core_type = #tpu.core_type<tc>} {
    %c0 = arith.constant 0 : index
    %c0_0 = arith.constant 0 : index
    %0 = vector.load %arg0[%c0, %c0_0] : memref<16x32xf32, #tpu.memory_space<vmem>>, vector<16x32xf32>
    %c0_1 = arith.constant 0 : index
    %c0_2 = arith.constant 0 : index
    %1 = vector.load %arg1[%c0_1, %c0_2] : memref<1x32xf32, #tpu.memory_space<vmem>>, vector<1x32xf32>
    %c0_3 = arith.constant 0 : index
    %c0_4 = arith.constant 0 : index
    %2 = vector.load %arg2[%c0_3, %c0_4] : memref<1x32xf32, #tpu.memory_space<vmem>>, vector<1x32xf32>
    %cst = arith.constant dense<0.000000e+00> : vector<16xf32>
    %3 = vector.multi_reduction <add>, %0, %cst [1] : vector<16x32xf32> to vector<16xf32>
    %4 = vector.shape_cast %3 : vector<16xf32> to vector<16x1xf32>
    %cst_5 = arith.constant 3.200000e+01 : f32
    %5 = vector.broadcast %cst_5 : f32 to vector<16x1xf32>
    %6 = arith.divf %4, %5 : vector<16x1xf32>
    %7 = vector.broadcast %6 : vector<16x1xf32> to vector<16x32xf32>
    %8 = arith.subf %0, %7 : vector<16x32xf32>
    %9 = arith.mulf %8, %8 : vector<16x32xf32>
    %cst_6 = arith.constant dense<0.000000e+00> : vector<16xf32>
    %10 = vector.multi_reduction <add>, %9, %cst_6 [1] : vector<16x32xf32> to vector<16xf32>
    %11 = vector.shape_cast %10 : vector<16xf32> to vector<16x1xf32>
    %cst_7 = arith.constant 3.200000e+01 : f32
    %12 = vector.broadcast %cst_7 : f32 to vector<16x1xf32>
    %13 = arith.divf %11, %12 : vector<16x1xf32>
    %cst_8 = arith.constant 9.99999996E-13 : f32
    %14 = vector.broadcast %cst_8 : f32 to vector<16x1xf32>
    %15 = arith.addf %13, %14 : vector<16x1xf32>
    %16 = math.rsqrt %15 : vector<16x1xf32>
    %17 = vector.broadcast %16 : vector<16x1xf32> to vector<16x32xf32>
    %18 = arith.mulf %8, %17 : vector<16x32xf32>
    %19 = vector.broadcast %1 : vector<1x32xf32> to vector<16x32xf32>
    %20 = arith.mulf %18, %19 : vector<16x32xf32>
    %21 = vector.broadcast %2 : vector<1x32xf32> to vector<16x32xf32>
    %22 = arith.addf %20, %21 : vector<16x32xf32>
    %c0_9 = arith.constant 0 : index
    %c0_10 = arith.constant 0 : index
    %23 = vector.load %arg3[%c0_9, %c0_10] : memref<16x32xf32, #tpu.memory_space<vmem>>, vector<16x32xf32>
    tpu.vector_store %arg3[%c0_9, %c0_10], %22 {strides = array<i32>} : memref<16x32xf32, #tpu.memory_space<vmem>>, vector<16x32xf32>,
    return
  }
}

module attributes {stable_mosaic.version = 11 : i64} {
  func.func @_head_kernel(%arg0: memref<2x32xf32, #tpu.memory_space<vmem>>, %arg1: memref<32x32xbf16, #tpu.memory_space<vmem>>, %arg2: memref<1x32xf32, #tpu.memory_space<vmem>>, %arg3: memref<32x128xbf16, #tpu.memory_space<vmem>>, %arg4: memref<1x128xf32, #tpu.memory_space<vmem>>, %arg5: memref<2x128xf32, #tpu.memory_space<vmem>>) attributes {dimension_semantics = [], scalar_prefetch = 0 : i64, scratch_operands = 0 : i64, tpu.core_type = #tpu.core_type<tc>} {
    %c0 = arith.constant 0 : index
    %c0_0 = arith.constant 0 : index
    %0 = vector.load %arg0[%c0, %c0_0] : memref<2x32xf32, #tpu.memory_space<vmem>>, vector<2x32xf32>
    %1 = arith.truncf %0 : vector<2x32xf32> to vector<2x32xbf16>
    %c0_1 = arith.constant 0 : index
    %c0_2 = arith.constant 0 : index
    %2 = vector.load %arg1[%c0_1, %c0_2] : memref<32x32xbf16, #tpu.memory_space<vmem>>, vector<32x32xbf16>
    %cst = arith.constant dense<0.000000e+00> : vector<2x32xf32>
    %3 = tpu.matmul %1, %2, %cst {dimension_numbers = #tpu.dot_dimension_numbers<[1], [0], [0], [1], [0, 0, 1, 1], [], []>} : vector<2x32xbf16>, vector<32x32xbf16>, vector<2x32xf32> -> vector<2x32xf32>
    %c0_3 = arith.constant 0 : index
    %c0_4 = arith.constant 0 : index
    %4 = vector.load %arg2[%c0_3, %c0_4] : memref<1x32xf32, #tpu.memory_space<vmem>>, vector<1x32xf32>
    %5 = vector.broadcast %4 : vector<1x32xf32> to vector<2x32xf32>
    %6 = arith.addf %3, %5 : vector<2x32xf32>
    %7 = math.tanh %6 : vector<2x32xf32>
    %8 = arith.truncf %7 : vector<2x32xf32> to vector<2x32xbf16>
    %c0_5 = arith.constant 0 : index
    %c0_6 = arith.constant 0 : index
    %9 = vector.load %arg3[%c0_5, %c0_6] : memref<32x128xbf16, #tpu.memory_space<vmem>>, vector<32x128xbf16>
    %cst_7 = arith.constant dense<0.000000e+00> : vector<2x128xf32>
    %10 = tpu.matmul %8, %9, %cst_7 {dimension_numbers = #tpu.dot_dimension_numbers<[1], [0], [0], [1], [0, 0, 1, 1], [], []>} : vector<2x32xbf16>, vector<32x128xbf16>, vector<2x128xf32> -> vector<2x128xf32>
    %c0_8 = arith.constant 0 : index
    %c0_9 = arith.constant 0 : index
    %11 = vector.load %arg4[%c0_8, %c0_9] : memref<1x128xf32, #tpu.memory_space<vmem>>, vector<1x128xf32>
    %12 = vector.broadcast %11 : vector<1x128xf32> to vector<2x128xf32>
    %13 = arith.addf %10, %12 : vector<2x128xf32>
    %c0_10 = arith.constant 0 : index
    %c0_11 = arith.constant 0 : index
    %14 = vector.load %arg5[%c0_10, %c0_11] : memref<2x128xf32, #tpu.memory_space<vmem>>, vector<2x128xf32>
    tpu.vector_store %arg5[%c0_10, %c0_11], %13 {strides = array<i32>} : memref<2x128xf32, #tpu.memory_space<vmem>>, vector<2x128xf32>,
    return
  }
}

module attributes {stable_mosaic.version = 11 : i64} {
  func.func @_encoder_layer_kernel(%arg0: memref<16x32xf32, #tpu.memory_space<vmem>>, %arg1: memref<2x8xf32, #tpu.memory_space<vmem>>, %arg2: memref<32x96xbf16, #tpu.memory_space<vmem>>, %arg3: memref<1x96xf32, #tpu.memory_space<vmem>>, %arg4: memref<32x32xbf16, #tpu.memory_space<vmem>>, %arg5: memref<1x32xf32, #tpu.memory_space<vmem>>, %arg6: memref<1x32xf32, #tpu.memory_space<vmem>>, %arg7: memref<1x32xf32, #tpu.memory_space<vmem>>, %arg8: memref<32x64xbf16, #tpu.memory_space<vmem>>, %arg9: memref<1x64xf32, #tpu.memory_space<vmem>>, %arg10: memref<64x32xbf16, #tpu.memory_space<vmem>>, %arg11: memref<1x32xf32, #tpu.memory_space<vmem>>, %arg12: memref<1x32xf32, #tpu.memory_space<vmem>>, %arg13: memref<1x32xf32, #tpu.memory_space<vmem>>, %arg14: memref<16x32xf32, #tpu.memory_space<vmem>>, %arg15: memref<16x32xf32, #tpu.memory_space<vmem>>) attributes {dimension_semantics = [], scalar_prefetch = 0 : i64, scratch_operands = 1 : i64, tpu.core_type = #tpu.core_type<tc>} {
    %c0 = arith.constant 0 : index
    %c0_0 = arith.constant 0 : index
    %0 = vector.load %arg0[%c0, %c0_0] : memref<16x32xf32, #tpu.memory_space<vmem>>, vector<16x32xf32>
    %1 = arith.truncf %0 : vector<16x32xf32> to vector<16x32xbf16>
    %c0_1 = arith.constant 0 : index
    %c0_2 = arith.constant 0 : index
    %2 = vector.load %arg2[%c0_1, %c0_2] : memref<32x96xbf16, #tpu.memory_space<vmem>>, vector<32x96xbf16>
    %cst = arith.constant dense<0.000000e+00> : vector<16x96xf32>
    %3 = tpu.matmul %1, %2, %cst {dimension_numbers = #tpu.dot_dimension_numbers<[1], [0], [0], [1], [0, 0, 1, 1], [], []>} : vector<16x32xbf16>, vector<32x96xbf16>, vector<16x96xf32> -> vector<16x96xf32>
    %c0_3 = arith.constant 0 : index
    %c0_4 = arith.constant 0 : index
    %4 = vector.load %arg3[%c0_3, %c0_4] : memref<1x96xf32, #tpu.memory_space<vmem>>, vector<1x96xf32>
    %5 = vector.broadcast %4 : vector<1x96xf32> to vector<16x96xf32>
    %6 = arith.addf %3, %5 : vector<16x96xf32>
    %7 = vector.extract_strided_slice %6 {offsets = [0, 0], sizes = [16, 32], strides = [1, 1]} : vector<16x96xf32> to vector<16x32xf32>
    %8 = vector.extract_strided_slice %6 {offsets = [0, 32], sizes = [16, 32], strides = [1, 1]} : vector<16x96xf32> to vector<16x32xf32>
    %9 = vector.extract_strided_slice %6 {offsets = [0, 64], sizes = [16, 32], strides = [1, 1]} : vector<16x96xf32> to vector<16x32xf32>
    %c0_5 = arith.constant 0 : index
    %c0_6 = arith.constant 0 : index
    %10 = vector.load %arg1[%c0_5, %c0_6] : memref<2x8xf32, #tpu.memory_space<vmem>>, vector<2x8xf32>
    %cst_7 = arith.constant 1.000000e+00 : f32
    %11 = vector.broadcast %cst_7 : f32 to vector<2x8xf32>
    %12 = arith.subf %11, %10 : vector<2x8xf32>
    %cst_8 = arith.constant -1.000000e+09 : f32
    %13 = vector.broadcast %cst_8 : f32 to vector<2x8xf32>
    %14 = arith.mulf %12, %13 : vector<2x8xf32>
    %15 = vector.extract_strided_slice %14 {offsets = [0, 0], sizes = [1, 8], strides = [1, 1]} : vector<2x8xf32> to vector<1x8xf32>
    %16 = vector.extract_strided_slice %7 {offsets = [0, 0], sizes = [8, 16], strides = [1, 1]} : vector<16x32xf32> to vector<8x16xf32>
    %17 = vector.extract_strided_slice %8 {offsets = [0, 0], sizes = [8, 16], strides = [1, 1]} : vector<16x32xf32> to vector<8x16xf32>
    %18 = vector.extract_strided_slice %9 {offsets = [0, 0], sizes = [8, 16], strides = [1, 1]} : vector<16x32xf32> to vector<8x16xf32>
    %19 = arith.truncf %16 : vector<8x16xf32> to vector<8x16xbf16>
    %20 = arith.truncf %17 : vector<8x16xf32> to vector<8x16xbf16>
    %cst_9 = arith.constant dense<0.000000e+00> : vector<8x8xf32>
    %21 = tpu.matmul %19, %20, %cst_9 {dimension_numbers = #tpu.dot_dimension_numbers<[1], [1], [0], [0], [0, 0, 1, 0], [], []>} : vector<8x16xbf16>, vector<8x16xbf16>, vector<8x8xf32> -> vector<8x8xf32>
    %cst_10 = arith.constant 2.500000e-01 : f32
    %22 = vector.broadcast %cst_10 : f32 to vector<8x8xf32>
    %23 = arith.mulf %21, %22 : vector<8x8xf32>
    %24 = vector.broadcast %15 : vector<1x8xf32> to vector<8x8xf32>
    %25 = arith.addf %23, %24 : vector<8x8xf32>
    %cst_11 = arith.constant dense<0xFF800000> : vector<8xf32>
    %26 = vector.multi_reduction <maximumf>, %25, %cst_11 [1] : vector<8x8xf32> to vector<8xf32>
    %27 = vector.shape_cast %26 : vector<8xf32> to vector<8x1xf32>
    %28 = vector.broadcast %27 : vector<8x1xf32> to vector<8x8xf32>
    %29 = arith.subf %25, %28 : vector<8x8xf32>
    %30 = math.exp %29 : vector<8x8xf32>
    %cst_12 = arith.constant dense<0.000000e+00> : vector<8xf32>
    %31 = vector.multi_reduction <add>, %30, %cst_12 [1] : vector<8x8xf32> to vector<8xf32>
    %32 = vector.shape_cast %31 : vector<8xf32> to vector<8x1xf32>
    %33 = tpu.reciprocal %32 {approx = true} : vector<8x1xf32> -> vector<8x1xf32>
    %34 = vector.broadcast %33 : vector<8x1xf32> to vector<8x8xf32>
    %35 = arith.mulf %30, %34 : vector<8x8xf32>
    %36 = arith.truncf %35 : vector<8x8xf32> to vector<8x8xbf16>
    %37 = arith.truncf %18 : vector<8x16xf32> to vector<8x16xbf16>
    %cst_13 = arith.constant dense<0.000000e+00> : vector<8x16xf32>
    %38 = tpu.matmul %36, %37, %cst_13 {dimension_numbers = #tpu.dot_dimension_numbers<[1], [0], [0], [1], [0, 0, 1, 1], [], []>} : vector<8x8xbf16>, vector<8x16xbf16>, vector<8x16xf32> -> vector<8x16xf32>
    %c0_14 = arith.constant 0 : index
    %c0_15 = arith.constant 0 : index
    %39 = vector.load %arg15[%c0_14, %c0_15] : memref<16x32xf32, #tpu.memory_space<vmem>>, vector<8x16xf32>
    tpu.vector_store %arg15[%c0_14, %c0_15], %38 {strides = array<i32>} : memref<16x32xf32, #tpu.memory_space<vmem>>, vector<8x16xf32>,
    %40 = vector.extract_strided_slice %7 {offsets = [0, 16], sizes = [8, 16], strides = [1, 1]} : vector<16x32xf32> to vector<8x16xf32>
    %41 = vector.extract_strided_slice %8 {offsets = [0, 16], sizes = [8, 16], strides = [1, 1]} : vector<16x32xf32> to vector<8x16xf32>
    %42 = vector.extract_strided_slice %9 {offsets = [0, 16], sizes = [8, 16], strides = [1, 1]} : vector<16x32xf32> to vector<8x16xf32>
    %43 = arith.truncf %40 : vector<8x16xf32> to vector<8x16xbf16>
    %44 = arith.truncf %41 : vector<8x16xf32> to vector<8x16xbf16>
    %cst_16 = arith.constant dense<0.000000e+00> : vector<8x8xf32>
    %45 = tpu.matmul %43, %44, %cst_16 {dimension_numbers = #tpu.dot_dimension_numbers<[1], [1], [0], [0], [0, 0, 1, 0], [], []>} : vector<8x16xbf16>, vector<8x16xbf16>, vector<8x8xf32> -> vector<8x8xf32>
    %cst_17 = arith.constant 2.500000e-01 : f32
    %46 = vector.broadcast %cst_17 : f32 to vector<8x8xf32>
    %47 = arith.mulf %45, %46 : vector<8x8xf32>
    %48 = vector.broadcast %15 : vector<1x8xf32> to vector<8x8xf32>
    %49 = arith.addf %47, %48 : vector<8x8xf32>
    %cst_18 = arith.constant dense<0xFF800000> : vector<8xf32>
    %50 = vector.multi_reduction <maximumf>, %49, %cst_18 [1] : vector<8x8xf32> to vector<8xf32>
    %51 = vector.shape_cast %50 : vector<8xf32> to vector<8x1xf32>
    %52 = vector.broadcast %51 : vector<8x1xf32> to vector<8x8xf32>
    %53 = arith.subf %49, %52 : vector<8x8xf32>
    %54 = math.exp %53 : vector<8x8xf32>
    %cst_19 = arith.constant dense<0.000000e+00> : vector<8xf32>
    %55 = vector.multi_reduction <add>, %54, %cst_19 [1] : vector<8x8xf32> to vector<8xf32>
    %56 = vector.shape_cast %55 : vector<8xf32> to vector<8x1xf32>
    %57 = tpu.reciprocal %56 {approx = true} : vector<8x1xf32> -> vector<8x1xf32>
    %58 = vector.broadcast %57 : vector<8x1xf32> to vector<8x8xf32>
    %59 = arith.mulf %54, %58 : vector<8x8xf32>
    %60 = arith.truncf %59 : vector<8x8xf32> to vector<8x8xbf16>
    %61 = arith.truncf %42 : vector<8x16xf32> to vector<8x16xbf16>
    %cst_20 = arith.constant dense<0.000000e+00> : vector<8x16xf32>
    %62 = tpu.matmul %60, %61, %cst_20 {dimension_numbers = #tpu.dot_dimension_numbers<[1], [0], [0], [1], [0, 0, 1, 1], [], []>} : vector<8x8xbf16>, vector<8x16xbf16>, vector<8x16xf32> -> vector<8x16xf32>
    %c0_21 = arith.constant 0 : index
    %c16 = arith.constant 16 : index
    %63 = vector.load %arg15[%c0_21, %c16] : memref<16x32xf32, #tpu.memory_space<vmem>>, vector<8x16xf32>
    tpu.vector_store %arg15[%c0_21, %c16], %62 {strides = array<i32>} : memref<16x32xf32, #tpu.memory_space<vmem>>, vector<8x16xf32>,
    %64 = vector.extract_strided_slice %14 {offsets = [1, 0], sizes = [1, 8], strides = [1, 1]} : vector<2x8xf32> to vector<1x8xf32>
    %65 = vector.extract_strided_slice %7 {offsets = [8, 0], sizes = [8, 16], strides = [1, 1]} : vector<16x32xf32> to vector<8x16xf32>
    %66 = vector.extract_strided_slice %8 {offsets = [8, 0], sizes = [8, 16], strides = [1, 1]} : vector<16x32xf32> to vector<8x16xf32>
    %67 = vector.extract_strided_slice %9 {offsets = [8, 0], sizes = [8, 16], strides = [1, 1]} : vector<16x32xf32> to vector<8x16xf32>
    %68 = arith.truncf %65 : vector<8x16xf32> to vector<8x16xbf16>
    %69 = arith.truncf %66 : vector<8x16xf32> to vector<8x16xbf16>
    %cst_22 = arith.constant dense<0.000000e+00> : vector<8x8xf32>
    %70 = tpu.matmul %68, %69, %cst_22 {dimension_numbers = #tpu.dot_dimension_numbers<[1], [1], [0], [0], [0, 0, 1, 0], [], []>} : vector<8x16xbf16>, vector<8x16xbf16>, vector<8x8xf32> -> vector<8x8xf32>
    %cst_23 = arith.constant 2.500000e-01 : f32
    %71 = vector.broadcast %cst_23 : f32 to vector<8x8xf32>
    %72 = arith.mulf %70, %71 : vector<8x8xf32>
    %73 = vector.broadcast %64 : vector<1x8xf32> to vector<8x8xf32>
    %74 = arith.addf %72, %73 : vector<8x8xf32>
    %cst_24 = arith.constant dense<0xFF800000> : vector<8xf32>
    %75 = vector.multi_reduction <maximumf>, %74, %cst_24 [1] : vector<8x8xf32> to vector<8xf32>
    %76 = vector.shape_cast %75 : vector<8xf32> to vector<8x1xf32>
    %77 = vector.broadcast %76 : vector<8x1xf32> to vector<8x8xf32>
    %78 = arith.subf %74, %77 : vector<8x8xf32>
    %79 = math.exp %78 : vector<8x8xf32>
    %cst_25 = arith.constant dense<0.000000e+00> : vector<8xf32>
    %80 = vector.multi_reduction <add>, %79, %cst_25 [1] : vector<8x8xf32> to vector<8xf32>
    %81 = vector.shape_cast %80 : vector<8xf32> to vector<8x1xf32>
    %82 = tpu.reciprocal %81 {approx = true} : vector<8x1xf32> -> vector<8x1xf32>
    %83 = vector.broadcast %82 : vector<8x1xf32> to vector<8x8xf32>
    %84 = arith.mulf %79, %83 : vector<8x8xf32>
    %85 = arith.truncf %84 : vector<8x8xf32> to vector<8x8xbf16>
    %86 = arith.truncf %67 : vector<8x16xf32> to vector<8x16xbf16>
    %cst_26 = arith.constant dense<0.000000e+00> : vector<8x16xf32>
    %87 = tpu.matmul %85, %86, %cst_26 {dimension_numbers = #tpu.dot_dimension_numbers<[1], [0], [0], [1], [0, 0, 1, 1], [], []>} : vector<8x8xbf16>, vector<8x16xbf16>, vector<8x16xf32> -> vector<8x16xf32>
    %c8 = arith.constant 8 : index
    %c0_27 = arith.constant 0 : index
    %88 = vector.load %arg15[%c8, %c0_27] : memref<16x32xf32, #tpu.memory_space<vmem>>, vector<8x16xf32>
    tpu.vector_store %arg15[%c8, %c0_27], %87 {strides = array<i32>} : memref<16x32xf32, #tpu.memory_space<vmem>>, vector<8x16xf32>,
    %89 = vector.extract_strided_slice %7 {offsets = [8, 16], sizes = [8, 16], strides = [1, 1]} : vector<16x32xf32> to vector<8x16xf32>
    %90 = vector.extract_strided_slice %8 {offsets = [8, 16], sizes = [8, 16], strides = [1, 1]} : vector<16x32xf32> to vector<8x16xf32>
    %91 = vector.extract_strided_slice %9 {offsets = [8, 16], sizes = [8, 16], strides = [1, 1]} : vector<16x32xf32> to vector<8x16xf32>
    %92 = arith.truncf %89 : vector<8x16xf32> to vector<8x16xbf16>
    %93 = arith.truncf %90 : vector<8x16xf32> to vector<8x16xbf16>
    %cst_28 = arith.constant dense<0.000000e+00> : vector<8x8xf32>
    %94 = tpu.matmul %92, %93, %cst_28 {dimension_numbers = #tpu.dot_dimension_numbers<[1], [1], [0], [0], [0, 0, 1, 0], [], []>} : vector<8x16xbf16>, vector<8x16xbf16>, vector<8x8xf32> -> vector<8x8xf32>
    %cst_29 = arith.constant 2.500000e-01 : f32
    %95 = vector.broadcast %cst_29 : f32 to vector<8x8xf32>
    %96 = arith.mulf %94, %95 : vector<8x8xf32>
    %97 = vector.broadcast %64 : vector<1x8xf32> to vector<8x8xf32>
    %98 = arith.addf %96, %97 : vector<8x8xf32>
    %cst_30 = arith.constant dense<0xFF800000> : vector<8xf32>
    %99 = vector.multi_reduction <maximumf>, %98, %cst_30 [1] : vector<8x8xf32> to vector<8xf32>
    %100 = vector.shape_cast %99 : vector<8xf32> to vector<8x1xf32>
    %101 = vector.broadcast %100 : vector<8x1xf32> to vector<8x8xf32>
    %102 = arith.subf %98, %101 : vector<8x8xf32>
    %103 = math.exp %102 : vector<8x8xf32>
    %cst_31 = arith.constant dense<0.000000e+00> : vector<8xf32>
    %104 = vector.multi_reduction <add>, %103, %cst_31 [1] : vector<8x8xf32> to vector<8xf32>
    %105 = vector.shape_cast %104 : vector<8xf32> to vector<8x1xf32>
    %106 = tpu.reciprocal %105 {approx = true} : vector<8x1xf32> -> vector<8x1xf32>
    %107 = vector.broadcast %106 : vector<8x1xf32> to vector<8x8xf32>
    %108 = arith.mulf %103, %107 : vector<8x8xf32>
    %109 = arith.truncf %108 : vector<8x8xf32> to vector<8x8xbf16>
    %110 = arith.truncf %91 : vector<8x16xf32> to vector<8x16xbf16>
    %cst_32 = arith.constant dense<0.000000e+00> : vector<8x16xf32>
    %111 = tpu.matmul %109, %110, %cst_32 {dimension_numbers = #tpu.dot_dimension_numbers<[1], [0], [0], [1], [0, 0, 1, 1], [], []>} : vector<8x8xbf16>, vector<8x16xbf16>, vector<8x16xf32> -> vector<8x16xf32>
    %c8_33 = arith.constant 8 : index
    %c16_34 = arith.constant 16 : index
    %112 = vector.load %arg15[%c8_33, %c16_34] : memref<16x32xf32, #tpu.memory_space<vmem>>, vector<8x16xf32>
    tpu.vector_store %arg15[%c8_33, %c16_34], %111 {strides = array<i32>} : memref<16x32xf32, #tpu.memory_space<vmem>>, vector<8x16xf32>,
    %c0_35 = arith.constant 0 : index
    %c0_36 = arith.constant 0 : index
    %113 = vector.load %arg15[%c0_35, %c0_36] : memref<16x32xf32, #tpu.memory_space<vmem>>, vector<16x32xf32>
    %114 = arith.truncf %113 : vector<16x32xf32> to vector<16x32xbf16>
    %c0_37 = arith.constant 0 : index
    %c0_38 = arith.constant 0 : index
    %115 = vector.load %arg4[%c0_37, %c0_38] : memref<32x32xbf16, #tpu.memory_space<vmem>>, vector<32x32xbf16>
    %cst_39 = arith.constant dense<0.000000e+00> : vector<16x32xf32>
    %116 = tpu.matmul %114, %115, %cst_39 {dimension_numbers = #tpu.dot_dimension_numbers<[1], [0], [0], [1], [0, 0, 1, 1], [], []>} : vector<16x32xbf16>, vector<32x32xbf16>, vector<16x32xf32> -> vector<16x32xf32>
    %c0_40 = arith.constant 0 : index
    %c0_41 = arith.constant 0 : index
    %117 = vector.load %arg5[%c0_40, %c0_41] : memref<1x32xf32, #tpu.memory_space<vmem>>, vector<1x32xf32>
    %118 = vector.broadcast %117 : vector<1x32xf32> to vector<16x32xf32>
    %119 = arith.addf %116, %118 : vector<16x32xf32>
    %120 = arith.addf %119, %0 : vector<16x32xf32>
    %c0_42 = arith.constant 0 : index
    %c0_43 = arith.constant 0 : index
    %121 = vector.load %arg6[%c0_42, %c0_43] : memref<1x32xf32, #tpu.memory_space<vmem>>, vector<1x32xf32>
    %c0_44 = arith.constant 0 : index
    %c0_45 = arith.constant 0 : index
    %122 = vector.load %arg7[%c0_44, %c0_45] : memref<1x32xf32, #tpu.memory_space<vmem>>, vector<1x32xf32>
    %cst_46 = arith.constant dense<0.000000e+00> : vector<16xf32>
    %123 = vector.multi_reduction <add>, %120, %cst_46 [1] : vector<16x32xf32> to vector<16xf32>
    %124 = vector.shape_cast %123 : vector<16xf32> to vector<16x1xf32>
    %cst_47 = arith.constant 3.200000e+01 : f32
    %125 = vector.broadcast %cst_47 : f32 to vector<16x1xf32>
    %126 = arith.divf %124, %125 : vector<16x1xf32>
    %127 = vector.broadcast %126 : vector<16x1xf32> to vector<16x32xf32>
    %128 = arith.subf %120, %127 : vector<16x32xf32>
    %129 = arith.mulf %128, %128 : vector<16x32xf32>
    %cst_48 = arith.constant dense<0.000000e+00> : vector<16xf32>
    %130 = vector.multi_reduction <add>, %129, %cst_48 [1] : vector<16x32xf32> to vector<16xf32>
    %131 = vector.shape_cast %130 : vector<16xf32> to vector<16x1xf32>
    %cst_49 = arith.constant 3.200000e+01 : f32
    %132 = vector.broadcast %cst_49 : f32 to vector<16x1xf32>
    %133 = arith.divf %131, %132 : vector<16x1xf32>
    %cst_50 = arith.constant 9.99999996E-13 : f32
    %134 = vector.broadcast %cst_50 : f32 to vector<16x1xf32>
    %135 = arith.addf %133, %134 : vector<16x1xf32>
    %136 = math.rsqrt %135 : vector<16x1xf32>
    %137 = vector.broadcast %136 : vector<16x1xf32> to vector<16x32xf32>
    %138 = arith.mulf %128, %137 : vector<16x32xf32>
    %139 = vector.broadcast %121 : vector<1x32xf32> to vector<16x32xf32>
    %140 = arith.mulf %138, %139 : vector<16x32xf32>
    %141 = vector.broadcast %122 : vector<1x32xf32> to vector<16x32xf32>
    %142 = arith.addf %140, %141 : vector<16x32xf32>
    %143 = arith.truncf %142 : vector<16x32xf32> to vector<16x32xbf16>
    %c0_51 = arith.constant 0 : index
    %c0_52 = arith.constant 0 : index
    %144 = vector.load %arg8[%c0_51, %c0_52] : memref<32x64xbf16, #tpu.memory_space<vmem>>, vector<32x64xbf16>
    %cst_53 = arith.constant dense<0.000000e+00> : vector<16x64xf32>
    %145 = tpu.matmul %143, %144, %cst_53 {dimension_numbers = #tpu.dot_dimension_numbers<[1], [0], [0], [1], [0, 0, 1, 1], [], []>} : vector<16x32xbf16>, vector<32x64xbf16>, vector<16x64xf32> -> vector<16x64xf32>
    %c0_54 = arith.constant 0 : index
    %c0_55 = arith.constant 0 : index
    %146 = vector.load %arg9[%c0_54, %c0_55] : memref<1x64xf32, #tpu.memory_space<vmem>>, vector<1x64xf32>
    %147 = vector.broadcast %146 : vector<1x64xf32> to vector<16x64xf32>
    %148 = arith.addf %145, %147 : vector<16x64xf32>
    %149 = arith.mulf %148, %148 : vector<16x64xf32>
    %150 = arith.mulf %148, %149 : vector<16x64xf32>
    %cst_56 = arith.constant 4.471500e-02 : f32
    %151 = vector.broadcast %cst_56 : f32 to vector<16x64xf32>
    %152 = arith.mulf %151, %150 : vector<16x64xf32>
    %153 = arith.addf %148, %152 : vector<16x64xf32>
    %cst_57 = arith.constant 0.797884583 : f32
    %154 = vector.broadcast %cst_57 : f32 to vector<16x64xf32>
    %155 = arith.mulf %154, %153 : vector<16x64xf32>
    %156 = math.tanh %155 : vector<16x64xf32>
    %cst_58 = arith.constant 1.000000e+00 : f32
    %157 = vector.broadcast %cst_58 : f32 to vector<16x64xf32>
    %158 = arith.addf %157, %156 : vector<16x64xf32>
    %cst_59 = arith.constant 5.000000e-01 : f32
    %159 = vector.broadcast %cst_59 : f32 to vector<16x64xf32>
    %160 = arith.mulf %159, %158 : vector<16x64xf32>
    %161 = arith.mulf %148, %160 : vector<16x64xf32>
    %162 = arith.truncf %161 : vector<16x64xf32> to vector<16x64xbf16>
    %c0_60 = arith.constant 0 : index
    %c0_61 = arith.constant 0 : index
    %163 = vector.load %arg10[%c0_60, %c0_61] : memref<64x32xbf16, #tpu.memory_space<vmem>>, vector<64x32xbf16>
    %cst_62 = arith.constant dense<0.000000e+00> : vector<16x32xf32>
    %164 = tpu.matmul %162, %163, %cst_62 {dimension_numbers = #tpu.dot_dimension_numbers<[1], [0], [0], [1], [0, 0, 1, 1], [], []>} : vector<16x64xbf16>, vector<64x32xbf16>, vector<16x32xf32> -> vector<16x32xf32>
    %c0_63 = arith.constant 0 : index
    %c0_64 = arith.constant 0 : index
    %165 = vector.load %arg11[%c0_63, %c0_64] : memref<1x32xf32, #tpu.memory_space<vmem>>, vector<1x32xf32>
    %166 = vector.broadcast %165 : vector<1x32xf32> to vector<16x32xf32>
    %167 = arith.addf %164, %166 : vector<16x32xf32>
    %168 = arith.addf %167, %142 : vector<16x32xf32>
    %c0_65 = arith.constant 0 : index
    %c0_66 = arith.constant 0 : index
    %169 = vector.load %arg12[%c0_65, %c0_66] : memref<1x32xf32, #tpu.memory_space<vmem>>, vector<1x32xf32>
    %c0_67 = arith.constant 0 : index
    %c0_68 = arith.constant 0 : index
    %170 = vector.load %arg13[%c0_67, %c0_68] : memref<1x32xf32, #tpu.memory_space<vmem>>, vector<1x32xf32>
    %cst_69 = arith.constant dense<0.000000e+00> : vector<16xf32>
    %171 = vector.multi_reduction <add>, %168, %cst_69 [1] : vector<16x32xf32> to vector<16xf32>
    %172 = vector.shape_cast %171 : vector<16xf32> to vector<16x1xf32>
    %cst_70 = arith.constant 3.200000e+01 : f32
    %173 = vector.broadcast %cst_70 : f32 to vector<16x1xf32>
    %174 = arith.divf %172, %173 : vector<16x1xf32>
    %175 = vector.broadcast %174 : vector<16x1xf32> to vector<16x32xf32>
    %176 = arith.subf %168, %175 : vector<16x32xf32>
    %177 = arith.mulf %176, %176 : vector<16x32xf32>
    %cst_71 = arith.constant dense<0.000000e+00> : vector<16xf32>
    %178 = vector.multi_reduction <add>, %177, %cst_71 [1] : vector<16x32xf32> to vector<16xf32>
    %179 = vector.shape_cast %178 : vector<16xf32> to vector<16x1xf32>
    %cst_72 = arith.constant 3.200000e+01 : f32
    %180 = vector.broadcast %cst_72 : f32 to vector<16x1xf32>
    %181 = arith.divf %179, %180 : vector<16x1xf32>
    %cst_73 = arith.constant 9.99999996E-13 : f32
    %182 = vector.broadcast %cst_73 : f32 to vector<16x1xf32>
    %183 = arith.addf %181, %182 : vector<16x1xf32>
    %184 = math.rsqrt %183 : vector<16x1xf32>
    %185 = vector.broadcast %184 : vector<16x1xf32> to vector<16x32xf32>
    %186 = arith.mulf %176, %185 : vector<16x32xf32>
    %187 = vector.broadcast %169 : vector<1x32xf32> to vector<16x32xf32>
    %188 = arith.mulf %186, %187 : vector<16x32xf32>
    %189 = vector.broadcast %170 : vector<1x32xf32> to vector<16x32xf32>
    %190 = arith.addf %188, %189 : vector<16x32xf32>
    %c0_74 = arith.constant 0 : index
    %c0_75 = arith.constant 0 : index
    %191 = vector.load %arg14[%c0_74, %c0_75] : memref<16x32xf32, #tpu.memory_space<vmem>>, vector<16x32xf32>
    tpu.vector_store %arg14[%c0_74, %c0_75], %190 {strides = array<i32>} : memref<16x32xf32, #tpu.memory_space<vmem>>, vector<16x32xf32>,
    return
  }
}

</mosaic_0001>

<bundles_post_ra>
// kernel: bert_classifier_forward.7
= control target key start
LH: loop header
LB: loop body
LE: loop exit
PB: predicated region body
PF: predicated region fallthrough
CT: control target
= control target key end

     0   :  { %s224_s0 = inlined_call_operand.vmem [shape: f32[2,32], index: 0, kind: input, shape index: {}]   ;;  %s225_s1 = inlined_call_operand.vmem [shape: bf16[32,32], index: 1, kind: input, shape index: {}]   ;;  %s226_s2 = inlined_call_operand.vmem [shape: f32[1,32], index: 2, kind: input, shape index: {}]   ;;  %s227_s3 = inlined_call_operand.vmem [shape: bf16[32,128], index: 3, kind: input, shape index: {}]   ;;  %s228_s4 = inlined_call_operand.vmem [shape: f32[1,128], index: 4, kind: input, shape index: {}]   ;;  %s229_s5 = inlined_call_operand.hbm [shape: f32[2,128], index: 5, kind: output, shape index: {}]  }
   0x1   :  { %v135_v0 = vld [vmem:[%s225_s1 + $0x8] sm:$0xff]  ;;  %v134_v1 = vld [vmem:[%s225_s1] sm:$0xff] }
   0x2   :  { %54 = vmatpush.bf16.msra.mxu0 %v135_v0  ;;  %v22_v2 = vld [vmem:[%s224_s0] sm:$0x3] }
   0x3   :  { %10 = vsyncpa [#allocation3], 0  ;;  %v23_v3 = vpack.c.bf16 %v22_v2, %v22_v2  ;;  %vm44_vm0 = vcmask 261120   ;;  %v137_v4 = vld [vmem:[%s227_s3 + $0x8] sm:$0xff]  ;;  %v136_v5 = vld [vmem:[%s227_s3] sm:$0xff]  ;;  %s169_s30 = smov [#allocation2]  }
   0x4   :  { %92 = vmatpush.bf16.msra.mxu1 %v137_v4  ;;  %v139_v6 = vld [vmem:[%s226_s2] ss:$0 sm:$0xff]  ;;  %s105_s6 = sshll.u32 %s169_s30, 4  ;;  %s107_s8 = sshll.u32 %s229_s5, 4  ;;  %s106_s6 = int_to_ptr.vmem [resolvable:$true] %s105_s6  ;;  %s108_s8 = int_to_ptr.hbm [resolvable:$true] %s107_s8 }
   0x5   :  { %v140_v12 = vld [vmem:[%s228_s4] ss:$0 sm:$0xff] }
   0x6   :  { %55 = vmatpush.bf16.msra.mxu0 %v134_v1 }
   0x8   :  { %93 = vmatpush.bf16.msra.mxu1 %v136_v5 }
   0x9   :  { %124 = vmatmul.msk.bf16.vlgmr.msra.gmra.mxu0 %vm44_vm0, %v23_v3 }
  0x86   :  { %v57_v7 = vpop.f32.mrf.mxu0 }
  0x87   :  { %v58_v8 = vadd.f32 %v139_v6, %v57_v7 }
  0x89   :  { %141 = vtanh.f32 %v58_v8 }
  0x8e   :  { %v59_v9 = vpop.f32.mrf.mxu0 }
  0x8f   :  { %v142_v10 = vpop.eup %141 }
  0x90   :  { %v62_v11 = vpack.c.bf16 %v142_v10, %v142_v10 }
  0x92   :  { %133 = vmatmul.msk.bf16.vlgmr.msra.gmra.mxu1 %vm44_vm0, %v62_v11 }
 0x10f   :  { %v95_v13 = vpop.f32.mrf.mxu1 }
 0x110   :  { %v96_v14 = vadd.f32 %v140_v12, %v95_v13 }
 0x112   :  { %99 = vst [vmem:[#allocation2] sm:$0x3] %v96_v14 }
 0x113   :  { %110 = dma.vmem_to_hbm [thread:$0]  %s106_s6, 32, %s108_s8, [#allocation3]  }
 0x117   :  { %v97_v15 = vpop.f32.mrf.mxu1 }
 0x118   :  { %167 = dma.done.wait [#allocation3], 32  }
 0x119   :  { %168 = vsyncadd [#allocation3], 4294967264 }
 0x11a   :  { %115 = vsyncpa [#allocation3], 1 }

// kernel: bert_classifier_forward.4
= control target key start
LH: loop header
LB: loop body
LE: loop exit
PB: predicated region body
PF: predicated region fallthrough
CT: control target
= control target key end

     0   :  { %vm18_vm0 = vcmask 261120   ;;  %v95_v4 = vmov 32.0   ;;  %s140_s0 = inlined_call_operand.vmem [shape: f32[16,32], index: 0, kind: input, shape index: {}]   ;;  %s141_s1 = inlined_call_operand.vmem [shape: f32[1,32], index: 1, kind: input, shape index: {}]   ;;  %s142_s2 = inlined_call_operand.vmem [shape: f32[1,32], index: 2, kind: input, shape index: {}]   ;;  %s143_s3 = inlined_call_operand.vmem [shape: f32[16,32], index: 3, kind: output, shape index: {}]  }
   0x1   :  { %v14_v0 = vld [vmem:[%s140_s0] sm:$0xff]  ;;  %v15_v2 = vld [vmem:[%s140_s0 + $0x8] sm:$0xff]  ;;  %89 = vrcp.f32 %v95_v4 }
   0x2   :  { %v19_v1 = vsel %vm18_vm0, %v14_v0, 0.0  ;;  %v22_v3 = vsel %vm18_vm0, %v15_v2, 0.0  ;;  %v87_v35 = vld [vmem:[%s141_s1] ss:$0 sm:$0xff] }
   0x3   :  { %20 = vadd.xlane.f32.xlu0 %v19_v1  ;;  %v88_v38 = vld [vmem:[%s142_s2] ss:$0 sm:$0xff] }
   0x7   :  { %v90_v5 = vpop.eup %89 }
   0x8   :  { %v26_v6 = vmul.f32 32.0, %v90_v5  ;;  %vm30_vm1 = vweird.f32 %v90_v5 }
   0xa   :  { %v27_v7 = vsub.f32 1.0, %v26_v6 }
   0xb   :  { %23 = vadd.xlane.f32.xlu0 %v22_v3 }
   0xc   :  { %v28_v8 = vmul.f32 %v90_v5, %v27_v7 }
   0xe   :  { %v29_v9 = vadd.f32 %v90_v5, %v28_v8 }
  0x10   :  { %v31_v10 = vsel %vm30_vm1, %v90_v5, %v29_v9 }
  0x76   :  { %v21_v11 = vpop.xlane.xlu0 %20 }
  0x77   :  { %v32_v12 = vmul.f32 %v31_v10, %v21_v11 }
  0x79   :  { %v34_v13 = vsub.f32 %v14_v0, %v32_v12 }
  0x7b   :  { %v36_v14 = vmul.f32 %v34_v13, %v34_v13 }
  0x7d   :  { %v38_v15 = vsel %vm18_vm0, %v36_v14, 0.0 }
  0x7e   :  { %39 = vadd.xlane.f32.xlu1 %v38_v15  ;;  %v24_v16 = vpop.xlane.xlu0 %23 }
  0x7f   :  { %v33_v17 = vmul.f32 %v31_v10, %v24_v16 }
  0x81   :  { %v35_v18 = vsub.f32 %v15_v2, %v33_v17 }
  0x83   :  { %v37_v19 = vmul.f32 %v35_v18, %v35_v18 }
  0x85   :  { %v41_v20 = vsel %vm18_vm0, %v37_v19, 0.0 }
  0x86   :  { %42 = vadd.xlane.f32.xlu1 %v41_v20 }
  0xf1   :  { %v40_v21 = vpop.xlane.xlu1 %39 }
  0xf2   :  { %v44_v22 = vmul.f32 %v40_v21, %v31_v10 }
  0xf4   :  { %v46_v23 = vadd.f32 1e-12, %v44_v22 }
  0xf6   :  { %91 = vrsqrt.f32 %v46_v23  ;;  %vm54_vm3 = vweird.f32 %v46_v23 }
  0xf9   :  { %v43_v24 = vpop.xlane.xlu1 %42 }
  0xfa   :  { %v45_v25 = vmul.f32 %v43_v24, %v31_v10 }
  0xfc   :  { %v92_v26 = vpop.eup %91  ;;  %v47_v27 = vadd.f32 1e-12, %v45_v25 }
  0xfd   :  { %v49_v28 = vmul.f32 %v92_v26, %v46_v23  ;;  %vm55_vm2 = vweird.f32 %v92_v26 }
  0xfe   :  { %93 = vrsqrt.f32 %v47_v27  ;;  %vm56_vm4 = vmor %vm54_vm3, %vm55_vm2  ;;  %vm64_vm6 = vweird.f32 %v47_v27 }
  0xff   :  { %v50_v29 = vmul.f32 %v92_v26, %v49_v28 }
 0x101   :  { %v51_v30 = vmul.f32 0.5, %v50_v29 }
 0x103   :  { %v52_v31 = vsub.f32 1.5, %v51_v30 }
 0x104   :  { %v94_v32 = vpop.eup %93 }
 0x105   :  { %v53_v33 = vmul.f32 %v92_v26, %v52_v31  ;;  %v59_v34 = vmul.f32 %v94_v32, %v47_v27  ;;  %vm65_vm5 = vweird.f32 %v94_v32 }
 0x106   :  { %vm66_vm7 = vmor %vm64_vm6, %vm65_vm5 }
 0x107   :  { %v57_v36 = vsel %vm56_vm4, %v92_v26, %v53_v33  ;;  %v60_v37 = vmul.f32 %v94_v32, %v59_v34 }
 0x108   :  { %v68_v39 = vmul.f32 %v57_v36, %v34_v13 }
 0x109   :  { %v61_v40 = vmul.f32 0.5, %v60_v37 }
 0x10a   :  { %v73_v41 = vmul.f32 %v87_v35, %v68_v39 }
 0x10b   :  { %v62_v42 = vsub.f32 1.5, %v61_v40 }
 0x10c   :  { %v78_v43 = vadd.f32 %v88_v38, %v73_v41 }
 0x10d   :  { %v63_v44 = vmul.f32 %v94_v32, %v62_v42 }
 0x10e   :  { %80 = vst.msk [vmem:[%s143_s3] sm:$0xff] %vm18_vm0, %v78_v43 }
 0x10f   :  { %v67_v45 = vsel %vm66_vm7, %v94_v32, %v63_v44 }
 0x110   :  { %v69_v46 = vmul.f32 %v67_v45, %v35_v18 }
 0x112   :  { %v74_v47 = vmul.f32 %v87_v35, %v69_v46 }
 0x114   :  { %v79_v48 = vadd.f32 %v88_v38, %v74_v47 }
 0x116   :  { %81 = vst.msk [vmem:[%s143_s3 + $0x8] sm:$0xff] %vm18_vm0, %v79_v48 }

// kernel: bert_classifier_forward.5
= control target key start
LH: loop header
LB: loop body
LE: loop exit
PB: predicated region body
PF: predicated region fallthrough
CT: control target
= control target key end

     0   :  { %vm71_vm0 = vcmask 261120   ;;  %s731_s23 = smov 80   ;;  %vm96_vm1 = vcmask 130048   ;;  %vm119_vm2 = vcmask 64512   ;;  %s733_s25 = smov 48   ;;  %vm137_vm3 = vcmask 1043456   ;;  %s951_s2 = inlined_call_operand.vmem [shape: bf16[32,96], index: 2, kind: input, shape index: {}]   ;;  %s952_s0 = inlined_call_operand.vmem [shape: f32[16,32], index: 0, kind: input, shape index: {}]   ;;  %s953_s3 = inlined_call_operand.vmem [shape: f32[1,96], index: 3, kind: input, shape index: {}]   ;;  %s954_s1 = inlined_call_operand.vmem [shape: f32[2,8], index: 1, kind: input, shape index: {}]   ;;  %s955_s5 = inlined_call_operand.vmem [shape: f32[1,32], index: 5, kind: input, shape index: {}]   ;;  %s956_s4 = inlined_call_operand.vmem [shape: bf16[32,32], index: 4, kind: input, shape index: {}]   ;;  %s957_s6 = inlined_call_operand.vmem [shape: f32[1,32], index: 6, kind: input, shape index: {}]   ;;  %s958_s7 = inlined_call_operand.vmem [shape: f32[1,32], index: 7, kind: input, shape index: {}]   ;;  %s959_s9 = inlined_call_operand.vmem [shape: f32[1,64], index: 9, kind: input, shape index: {}]   ;;  %s960_s8 = inlined_call_operand.vmem [shape: bf16[32,64], index: 8, kind: input, shape index: {}]   ;;  %s961_s11 = inlined_call_operand.vmem [shape: f32[1,32], index: 11, kind: input, shape index: {}]   ;;  %s962_s10 = inlined_call_operand.vmem [shape: bf16[64,32], index: 10, kind: input, shape index: {}]   ;;  %s963_s12 = inlined_call_operand.vmem [shape: f32[1,32], index: 12, kind: input, shape index: {}]   ;;  %s964_s13 = inlined_call_operand.vmem [shape: f32[1,32], index: 13, kind: input, shape index: {}]   ;;  %s965_s14 = inlined_call_operand.vmem [shape: f32[16,32], index: 14, kind: output, shape index: {}]  }
   0x1   :  { %v675_v0 = vld [vmem:[%s951_s2 + $0x8] sm:$0xff]  ;;  %v674_v1 = vld [vmem:[%s951_s2] sm:$0xff]  ;;  %s729_s2 = smov 112   ;;  %s734_s26 = smov 16   ;;  %vm217_vm4 = vcmask 261248   ;;  %vm540_vm12 = vcmask 523264  }
   0x2   :  { %81 = vmatpush.bf16.msra.mxu0 %v675_v0  ;;  %v820_v2 = vld [vmem:[%s952_s0] sm:$0xff]  ;;  %v825_v3 = vld [vmem:[%s952_s0 + $0x8] sm:$0xff]  ;;  %s730_s0 = smov 96  }
   0x3   :  { %v50_v4 = vpack.c.bf16 %v825_v3, %v820_v2  ;;  %v691_v5 = vld [vmem:[%s953_s3] ss:$0 sm:$0xff] }
   0x4   :  { %v89_v22 = vld [vmem:[%s954_s1] sm:$0x3]  ;;  %s732_s1 = smov 64  }
   0x5   :  { %v90_v23 = vsub.f32 1.0, %v89_v22 }
   0x6   :  { %82 = vmatpush.bf16.msra.mxu0 %v674_v1 }
   0x7   :  { %v91_v24 = vmul.f32 -1e+09, %v90_v23 }
   0x9   :  { %630 = vmatmul.msk.bf16.vlgmr.msra.gmra.mxu0 %vm71_vm0, %v50_v4  ;;  %v243_v25 = vperm.slane %v91_v24, 1  ;;  %v117_v29 = vperm.slane %v91_v24, 0 }
  0x86   :  { %v84_v6 = vpop.f32.mrf.mxu0 }
  0x87   :  { %v85_v7 = vadd.f32 %v691_v5, %v84_v6 }
  0x89   :  { %v833_v8 = vpack.c.bf16 %v85_v7, %v85_v7 }
  0x8b   :  { %155 = vrot.lane.b32.xlu1 %v833_v8, %s729_s2  ;;  %94 = vrot.lane.b32.xlu0 %v833_v8, %s730_s0 }
  0x8e   :  { %v86_v9 = vpop.f32.mrf.mxu0 }
  0x8f   :  { %v87_v10 = vadd.f32 %v691_v5, %v86_v9 }
  0x91   :  { %v219_v11 = vpack.c.bf16 %v87_v10, %v87_v10 }
  0x93   :  { %279 = vrot.lane.b32.xlu2 %v219_v11, %s729_s2  ;;  %281 = vrot.lane.b32.xlu1 %v219_v11, %s731_s23 }
  0x94   :  { %157 = vrot.lane.b32.xlu0 %v833_v8, %s731_s23 }
  0x9b   :  { %221 = vrot.lane.b32.xlu2 %v219_v11, %s730_s0 }
  0xed   :  { %v280_v12 = vpop.permute.xlu2 %279 }
  0xf5   :  { %v222_v13 = vpop.permute.xlu2 %221 }
  0xf6   :  { %v227_v14 = vsel %vm96_vm1, %v222_v13, 0 }
  0xf7   :  { %236 = vmatpush.bf16.xpose.msrb.mxu0 %v227_v14 }
  0xfd   :  { %v156_v15 = vpop.permute.xlu1 %155  ;;  %v95_v16 = vpop.permute.xlu0 %94 }
  0xfe   :  { %635 = vmatmul.msk.bf16.vlgmr.msrb.gmra.mxu0 %vm96_vm1, %v219_v11  ;;  %v101_v17 = vsel %vm96_vm1, %v95_v16, 0 }
  0xff   :  { %110 = vmatpush.bf16.xpose.msra.mxu1 %v101_v17 }
 0x105   :  { %v282_v18 = vpop.permute.xlu1 %281 }
 0x106   :  { %v158_v19 = vpop.permute.xlu0 %157  ;;  %631 = vmatmul.msk.bf16.vlgmr.msra.gmra.mxu1 %vm96_vm1, %v833_v8  ;;  %v287_v20 = vsel %vm96_vm1, %v282_v18, 0 }
 0x107   :  { %v163_v21 = vsel %vm96_vm1, %v158_v19, 0 }
 0x108   :  { %172 = vmatpush.bf16.xpose.msra.mxu3 %v163_v21 }
 0x10f   :  { %633 = vmatmul.msk.bf16.vlgmr.msra.gmra.mxu3 %vm96_vm1, %v156_v15 }
 0x110   :  { %296 = vmatpush.bf16.xpose.msrb.mxu3 %v287_v20 }
 0x11f   :  { %637 = vmatmul.msk.bf16.vlgmr.msrb.gmra.mxu3 %vm96_vm1, %v280_v12 }
 0x17b   :  { %v238_v26 = vpop.f32.mrf.mxu0 }
 0x17c   :  { %v242_v27 = vmul.f32 0.25, %v238_v26 }
 0x17e   :  { %v850_v28 = vadd.f32 %v243_v25, %v242_v27 }
 0x180   :  { %v245_v62 = vsel %vm119_vm2, %v850_v28, -inf }
 0x183   :  { %v112_v30 = vpop.f32.mrf.mxu1  ;;  %v240_v31 = vpop.f32.mrf.mxu0 }
 0x184   :  { %v116_v32 = vmul.f32 0.25, %v112_v30 }
 0x186   :  { %v118_v33 = vadd.f32 %v117_v29, %v116_v32 }
 0x188   :  { %v120_v34 = vsel %vm119_vm2, %v118_v33, -inf }
 0x189   :  { %121 = vmax.xlane.f32.xlu0 %v120_v34 }
 0x18b   :  { %v114_v35 = vpop.f32.mrf.mxu1 }
 0x18c   :  { %v677_v35 = vld [vmem:[%s956_s4 + $0x8] sm:$0xff] }
 0x18d   :  { %374 = vmatpush.bf16.msra.mxu0 %v677_v35 }
 0x192   :  { %v174_v36 = vpop.f32.mrf.mxu3 }
 0x193   :  { %v178_v37 = vmul.f32 0.25, %v174_v36 }
 0x195   :  { %v179_v38 = vadd.f32 %v178_v37, %v117_v29  ;;  %v676_v37 = vld [vmem:[%s956_s4] sm:$0xff] }
 0x196   :  { %375 = vmatpush.bf16.msra.mxu0 %v676_v37  ;;  %v683_v37 = vld [vmem:[%s962_s10 + $0x18] sm:$0xff] }
 0x197   :  { %v180_v39 = vsel %vm119_vm2, %v179_v38, -inf  ;;  %548 = vmatpush.bf16.msra.mxu3 %v683_v37 }
 0x198   :  { %181 = vmax.xlane.f32.xlu1 %v180_v39 }
 0x19a   :  { %v176_v40 = vpop.f32.mrf.mxu3 }
 0x19d   :  { %132 = vrot.lane.b32.xlu0 %v833_v8, %s732_s1 }
 0x1a2   :  { %v298_v41 = vpop.f32.mrf.mxu3 }
 0x1a3   :  { %v302_v42 = vmul.f32 0.25, %v298_v41 }
 0x1a5   :  { %316 = vrot.lane.b32.xlu0 %v219_v11, %s733_s25  ;;  %v303_v43 = vadd.f32 %v302_v42, %v243_v25 }
 0x1a7   :  { %v304_v44 = vsel %vm119_vm2, %v303_v43, -inf }
 0x1a8   :  { %305 = vmax.xlane.f32.xlu2 %v304_v44  ;;  %v692_v44 = vld [vmem:[%s955_s5] ss:$0 sm:$0xff] }
 0x1aa   :  { %v300_v45 = vpop.f32.mrf.mxu3 }
 0x1ad   :  { %257 = vrot.lane.b32.xlu0 %v219_v11, %s732_s1 }
 0x1fc   :  { %v122_v46 = vpop.xlane.xlu0 %121 }
 0x1fd   :  { %v123_v47 = vsub.f32 %v118_v33, %v122_v46 }
 0x1ff   :  { %v124_v48 = vmul.f32 1.442695, %v123_v47 }
 0x201   :  { %699 = vpow2.f32 %v124_v48 }
 0x207   :  { %v700_v49 = vpop.eup %699 }
 0x208   :  { %v126_v50 = vsel %vm119_vm2, %v700_v49, 0.0 }
 0x209   :  { %127 = vadd.xlane.f32.xlu2 %v126_v50 }
 0x20b   :  { %v182_v51 = vpop.xlane.xlu1 %181 }
 0x20c   :  { %v183_v52 = vsub.f32 %v179_v38, %v182_v51 }
 0x20e   :  { %v184_v53 = vmul.f32 1.442695, %v183_v52 }
 0x20f   :  { %v133_v54 = vpop.permute.xlu0 %132 }
 0x210   :  { %701 = vpow2.f32 %v184_v53  ;;  %v139_v55 = vsel %vm137_vm3, %v133_v54, 0  ;;  %v735_v53 = vmov 32.0  }
 0x211   :  { %148 = vmatpush.bf16.msra.mxu2 %v139_v55 }
 0x216   :  { %v702_v56 = vpop.eup %701 }
 0x217   :  { %v186_v57 = vsel %vm119_vm2, %v702_v56, 0.0  ;;  %v317_v58 = vpop.permute.xlu0 %316 }
 0x218   :  { %187 = vadd.xlane.f32.xlu1 %v186_v57  ;;  %v322_v12 = vsel %vm137_vm3, %v317_v58, 0 }
 0x21b   :  { %v306_v59 = vpop.xlane.xlu2 %305 }
 0x21c   :  { %v307_v60 = vsub.f32 %v303_v43, %v306_v59 }
 0x21e   :  { %v308_v61 = vmul.f32 1.442695, %v307_v60 }
 0x21f   :  { %v258_v63 = vpop.permute.xlu0 %257 }
 0x220   :  { %703 = vpow2.f32 %v308_v61  ;;  %246 = vmax.xlane.f32.xlu1 %v245_v62  ;;  %v263_v0 = vsel %vm137_vm3, %v258_v63, 0 }
 0x221   :  { %192 = vrot.lane.b32.xlu2 %v833_v8, %s733_s25  ;;  %272 = vmatpush.bf16.msrb.mxu1 %v263_v0 }
 0x226   :  { %v704_v1 = vpop.eup %703 }
 0x227   :  { %v310_v4 = vsel %vm119_vm2, %v704_v1, 0.0 }
 0x228   :  { %311 = vadd.xlane.f32.xlu1 %v310_v4 }
 0x27c   :  { %v128_v5 = vpop.xlane.xlu2 %127 }
 0x27d   :  { %705 = vrcp.f32 %v128_v5 }
 0x283   :  { %v706_v6 = vpop.eup %705 }
 0x284   :  { %v193_v7 = vpop.permute.xlu2 %192  ;;  %v130_v9 = vmul.f32 %v706_v6, %v700_v49  ;;  %v679_v6 = vld [vmem:[%s960_s8 + $0x8] sm:$0xff] }
 0x285   :  { %v198_v10 = vsel %vm137_vm3, %v193_v7, 0  ;;  %477 = vmatpush.bf16.msra.mxu1 %v679_v6 }
 0x286   :  { %207 = vmatpush.bf16.msrb.mxu2 %v198_v10  ;;  %v131_v11 = vpack.c.bf16 %v130_v9, %v130_v9 }
 0x288   :  { %632 = vmatmul.msk.bf16.vlgmr.msra.gmra.mxu2 %vm119_vm2, %v131_v11  ;;  %v678_v11 = vld [vmem:[%s960_s8] sm:$0xff] }
 0x289   :  { %478 = vmatpush.bf16.msra.mxu1 %v678_v11 }
 0x28a   :  { %331 = vmatpush.bf16.msra.mxu2 %v322_v12 }
 0x28b   :  { %v188_v8 = vpop.xlane.xlu1 %187 }
 0x28c   :  { %707 = vrcp.f32 %v188_v8 }
 0x292   :  { %v708_v13 = vpop.eup %707 }
 0x293   :  { %v190_v14 = vmul.f32 %v708_v13, %v702_v56  ;;  %v247_v15 = vpop.xlane.xlu1 %246 }
 0x294   :  { %v248_v16 = vsub.f32 %v850_v28, %v247_v15 }
 0x295   :  { %v191_v18 = vpack.c.bf16 %v190_v14, %v190_v14 }
 0x296   :  { %v249_v17 = vmul.f32 1.442695, %v248_v16 }
 0x298   :  { %709 = vpow2.f32 %v249_v17  ;;  %634 = vmatmul.msk.bf16.vlgmr.msrb.gmra.mxu2 %vm119_vm2, %v191_v18 }
 0x29b   :  { %v312_v19 = vpop.xlane.xlu1 %311 }
 0x29c   :  { %711 = vrcp.f32 %v312_v19 }
 0x29e   :  { %v710_v20 = vpop.eup %709 }
 0x29f   :  { %v251_v21 = vsel %vm119_vm2, %v710_v20, 0.0 }
 0x2a0   :  { %252 = vadd.xlane.f32.xlu1 %v251_v21 }
 0x2a2   :  { %v712_v22 = vpop.eup %711 }
 0x2a3   :  { %v314_v23 = vmul.f32 %v712_v22, %v704_v1 }
 0x2a5   :  { %v315_v24 = vpack.c.bf16 %v314_v23, %v314_v23 }
 0x2a8   :  { %638 = vmatmul.msk.bf16.vlgmr.msra.gmra.mxu2 %vm119_vm2, %v315_v24 }
 0x30b   :  { %v150_v25 = vpop.f32.mrf.mxu2 }
 0x30c   :  { %154 = vst.msk [vmem:[#allocation2] sm:$0xff] %vm96_vm1, %v150_v25 }
 0x313   :  { %v253_v26 = vpop.xlane.xlu1 %252  ;;  %v152_v27 = vpop.f32.mrf.mxu2 }
 0x314   :  { %713 = vrcp.f32 %v253_v26  ;;  %v693_v26 = vld [vmem:[%s957_s6] ss:$0 sm:$0xff] }
 0x315   :  { %715 = vrcp.f32 %v735_v53 }
 0x31a   :  { %v714_v28 = vpop.eup %713 }
 0x31b   :  { %v255_v29 = vmul.f32 %v714_v28, %v710_v20  ;;  %v209_v30 = vpop.f32.mrf.mxu2  ;;  %v716_v54 = vpop.eup %715 }
 0x31c   :  { %214 = vrot.lane.b32.xlu2 %v209_v30, %s734_s26  ;;  %v393_v55 = vmul.f32 32.0, %v716_v54  ;;  %vm397_vm5 = vweird.f32 %v716_v54  ;;  %v694_v30 = vld [vmem:[%s958_s7] ss:$0 sm:$0xff] }
 0x31d   :  { %v256_v31 = vpack.c.bf16 %v255_v29, %v255_v29 }
 0x31e   :  { %v394_v56 = vsub.f32 1.0, %v393_v55 }
 0x31f   :  { %636 = vmatmul.msk.bf16.vlgmr.msrb.gmra.mxu1 %vm119_vm2, %v256_v31 }
 0x320   :  { %v395_v57 = vmul.f32 %v716_v54, %v394_v56 }
 0x322   :  { %v396_v58 = vadd.f32 %v716_v54, %v395_v57 }
 0x323   :  { %v211_v32 = vpop.f32.mrf.mxu2 }
 0x324   :  { %v890_v59 = vsel %vm397_vm5, %v716_v54, %v396_v58 }
 0x32b   :  { %v333_v33 = vpop.f32.mrf.mxu2 }
 0x32c   :  { %338 = vrot.lane.b32.xlu1 %v333_v33, %s734_s26 }
 0x333   :  { %v335_v34 = vpop.f32.mrf.mxu2 }
 0x376   :  { %v215_v36 = vpop.permute.xlu2 %214 }
 0x377   :  { %218 = vst.msk [vmem:[#allocation2] sm:$0xff] %vm217_vm4, %v215_v36 }
 0x37e   :  { %v342_v41 = vld [vmem:[#allocation2] sm:$0xff] }
 0x39c   :  { %v274_v38 = vpop.f32.mrf.mxu1 }
 0x39d   :  { %278 = vst.msk [vmem:[#allocation2 + $0x8] sm:$0xff] %vm96_vm1, %v274_v38  ;;  %v682_v38 = vld [vmem:[%s962_s10 + $0x10] sm:$0xff] }
 0x39e   :  { %v339_v39 = vpop.permute.xlu1 %338  ;;  %549 = vmatpush.bf16.msra.mxu3 %v682_v38 }
 0x39f   :  { %341 = vst.msk [vmem:[#allocation2 + $0x8] sm:$0xff] %vm217_vm4, %v339_v39  ;;  %v681_v39 = vld [vmem:[%s962_s10 + $0x8] sm:$0xff] }
 0x3a2   :  { %550 = vmatpush.bf16.msra.mxu3 %v681_v39 }
 0x3a4   :  { %v276_v40 = vpop.f32.mrf.mxu1 }
 0x3a5   :  { %v695_v40 = vld [vmem:[%s959_s9] ss:$0 sm:$0xff] }
 0x3a6   :  { %v343_v42 = vld [vmem:[#allocation2 + $0x8] sm:$0xff] }
 0x3a7   :  { %v344_v43 = vpack.c.bf16 %v343_v42, %v342_v41  ;;  %v680_v42 = vld [vmem:[%s962_s10] sm:$0xff] }
 0x3a8   :  { %551 = vmatpush.bf16.msra.mxu3 %v680_v42 }
 0x3a9   :  { %647 = vmatmul.msk.bf16.vlgmr.msra.gmra.mxu0 %vm71_vm0, %v344_v43 }
 0x426   :  { %v377_v45 = vpop.f32.mrf.mxu0 }
 0x427   :  { %v378_v46 = vadd.f32 %v692_v44, %v377_v45 }
 0x429   :  { %v382_v47 = vadd.f32 %v378_v46, %v820_v2 }
 0x42b   :  { %v386_v48 = vsel %vm71_vm0, %v382_v47, 0.0 }
 0x42c   :  { %387 = vadd.xlane.f32.xlu0 %v386_v48 }
 0x42e   :  { %v379_v49 = vpop.f32.mrf.mxu0 }
 0x42f   :  { %v380_v50 = vadd.f32 %v692_v44, %v379_v49 }
 0x431   :  { %v383_v51 = vadd.f32 %v380_v50, %v825_v3 }
 0x433   :  { %v389_v52 = vsel %vm71_vm0, %v383_v51, 0.0 }
 0x434   :  { %390 = vadd.xlane.f32.xlu2 %v389_v52 }
 0x49f   :  { %v388_v2 = vpop.xlane.xlu0 %387 }
 0x4a0   :  { %v399_v60 = vmul.f32 %v890_v59, %v388_v2 }
 0x4a2   :  { %v401_v61 = vsub.f32 %v382_v47, %v399_v60 }
 0x4a4   :  { %v403_v62 = vmul.f32 %v401_v61, %v401_v61 }
 0x4a6   :  { %v405_v3 = vsel %vm71_vm0, %v403_v62, 0.0 }
 0x4a7   :  { %v391_v63 = vpop.xlane.xlu2 %390  ;;  %406 = vadd.xlane.f32.xlu1 %v405_v3 }
 0x4a8   :  { %v400_v0 = vmul.f32 %v890_v59, %v391_v63 }
 0x4aa   :  { %v402_v1 = vsub.f32 %v383_v51, %v400_v0  ;;  %v696_v0 = vld [vmem:[%s961_s11] ss:$0 sm:$0xff] }
 0x4ac   :  { %v404_v4 = vmul.f32 %v402_v1, %v402_v1 }
 0x4ae   :  { %v408_v5 = vsel %vm71_vm0, %v404_v4, 0.0 }
 0x4af   :  { %409 = vadd.xlane.f32.xlu0 %v408_v5 }
 0x51a   :  { %v407_v7 = vpop.xlane.xlu1 %406 }
 0x51b   :  { %v411_v9 = vmul.f32 %v407_v7, %v890_v59 }
 0x51d   :  { %v413_v10 = vadd.f32 1e-12, %v411_v9 }
 0x51f   :  { %717 = vrsqrt.f32 %v413_v10  ;;  %vm421_vm7 = vweird.f32 %v413_v10 }
 0x522   :  { %v410_v12 = vpop.xlane.xlu0 %409 }
 0x523   :  { %v412_v8 = vmul.f32 %v410_v12, %v890_v59 }
 0x525   :  { %v718_v13 = vpop.eup %717  ;;  %v414_v14 = vadd.f32 1e-12, %v412_v8 }
 0x526   :  { %v416_v15 = vmul.f32 %v718_v13, %v413_v10  ;;  %vm422_vm6 = vweird.f32 %v718_v13 }
 0x527   :  { %719 = vrsqrt.f32 %v414_v14  ;;  %vm423_vm8 = vmor %vm421_vm7, %vm422_vm6  ;;  %vm431_vm10 = vweird.f32 %v414_v14 }
 0x528   :  { %v417_v16 = vmul.f32 %v718_v13, %v416_v15 }
 0x52a   :  { %v418_v17 = vmul.f32 0.5, %v417_v16 }
 0x52c   :  { %v419_v18 = vsub.f32 1.5, %v418_v17 }
 0x52d   :  { %v720_v19 = vpop.eup %719 }
 0x52e   :  { %v420_v20 = vmul.f32 %v718_v13, %v419_v18  ;;  %v426_v21 = vmul.f32 %v720_v19, %v414_v14  ;;  %vm432_vm9 = vweird.f32 %v720_v19 }
 0x52f   :  { %vm433_vm11 = vmor %vm431_vm10, %vm432_vm9 }
 0x530   :  { %v427_v22 = vmul.f32 %v720_v19, %v426_v21  ;;  %v424_v23 = vsel %vm423_vm8, %v718_v13, %v420_v20 }
 0x531   :  { %v435_v27 = vmul.f32 %v424_v23, %v401_v61 }
 0x532   :  { %v428_v24 = vmul.f32 0.5, %v427_v22 }
 0x533   :  { %v440_v31 = vmul.f32 %v693_v26, %v435_v27 }
 0x534   :  { %v429_v25 = vsub.f32 1.5, %v428_v24 }
 0x535   :  { %v445_v34 = vadd.f32 %v694_v30, %v440_v31 }
 0x536   :  { %v430_v28 = vmul.f32 %v720_v19, %v429_v25 }
 0x538   :  { %v434_v29 = vsel %vm433_vm11, %v720_v19, %v430_v28 }
 0x539   :  { %v436_v32 = vmul.f32 %v434_v29, %v402_v1 }
 0x53b   :  { %v441_v33 = vmul.f32 %v693_v26, %v436_v32 }
 0x53d   :  { %v446_v35 = vadd.f32 %v694_v30, %v441_v33 }
 0x53f   :  { %v447_v36 = vpack.c.bf16 %v446_v35, %v445_v34 }
 0x541   :  { %656 = vmatmul.msk.bf16.vlgmr.msra.gmra.mxu1 %vm71_vm0, %v447_v36 }
 0x5be   :  { %v480_v41 = vpop.f32.mrf.mxu1 }
 0x5bf   :  { %v481_v43 = vadd.f32 %v695_v40, %v480_v41 }
 0x5c1   :  { %v485_v44 = vmul.f32 %v481_v43, %v481_v43 }
 0x5c3   :  { %v487_v45 = vmul.f32 %v485_v44, %v481_v43 }
 0x5c5   :  { %v489_v46 = vmul.f32 0.044715, %v487_v45 }
 0x5c6   :  { %v482_v47 = vpop.f32.mrf.mxu1 }
 0x5c7   :  { %v491_v48 = vadd.f32 %v489_v46, %v481_v43  ;;  %v483_v49 = vadd.f32 %v695_v40, %v482_v47 }
 0x5c9   :  { %v493_v50 = vmul.f32 0.7978846, %v491_v48  ;;  %v486_v51 = vmul.f32 %v483_v49, %v483_v49 }
 0x5cb   :  { %v488_v52 = vmul.f32 %v486_v51, %v483_v49  ;;  %721 = vtanh.f32 %v493_v50 }
 0x5cd   :  { %v490_v53 = vmul.f32 0.044715, %v488_v52 }
 0x5cf   :  { %v492_v54 = vadd.f32 %v490_v53, %v483_v49 }
 0x5d1   :  { %v494_v55 = vmul.f32 0.7978846, %v492_v54  ;;  %v722_v56 = vpop.eup %721 }
 0x5d2   :  { %v497_v57 = vadd.f32 1.0, %v722_v56 }
 0x5d3   :  { %723 = vtanh.f32 %v494_v55 }
 0x5d4   :  { %v499_v2 = vmul.f32 0.5, %v497_v57 }
 0x5d6   :  { %v501_v62 = vmul.f32 %v499_v2, %v481_v43 }
 0x5d9   :  { %v724_v58 = vpop.eup %723 }
 0x5da   :  { %v498_v60 = vadd.f32 1.0, %v724_v58 }
 0x5dc   :  { %v500_v61 = vmul.f32 0.5, %v498_v60 }
 0x5de   :  { %v502_v3 = vmul.f32 %v500_v61, %v483_v49 }
 0x5e0   :  { %v503_v63 = vpack.c.bf16 %v502_v3, %v501_v62 }
 0x5e2   :  { %673 = vmatmul.msk.bf16.vlgmr.msra.gmra.mxu3 %vm540_vm12, %v503_v63 }
 0x665   :  { %v553_v1 = vpop.f32.mrf.mxu3 }
 0x666   :  { %v554_v4 = vadd.f32 %v696_v0, %v553_v1 }
 0x668   :  { %v558_v5 = vadd.f32 %v554_v4, %v445_v34 }
 0x66a   :  { %v562_v6 = vsel %vm71_vm0, %v558_v5, 0.0 }
 0x66b   :  { %563 = vadd.xlane.f32.xlu2 %v562_v6 }
 0x66d   :  { %v555_v7 = vpop.f32.mrf.mxu3 }
 0x66e   :  { %v556_v9 = vadd.f32 %v696_v0, %v555_v7 }
 0x670   :  { %v559_v10 = vadd.f32 %v556_v9, %v446_v35  ;;  %v697_v35 = vld [vmem:[%s963_s12] ss:$0 sm:$0xff] }
 0x672   :  { %v565_v11 = vsel %vm71_vm0, %v559_v10, 0.0 }
 0x673   :  { %566 = vadd.xlane.f32.xlu0 %v565_v11 }
 0x6de   :  { %v564_v12 = vpop.xlane.xlu2 %563 }
 0x6df   :  { %v568_v8 = vmul.f32 %v564_v12, %v890_v59 }
 0x6e1   :  { %v570_v13 = vsub.f32 %v558_v5, %v568_v8 }
 0x6e3   :  { %v572_v14 = vmul.f32 %v570_v13, %v570_v13 }
 0x6e5   :  { %v574_v15 = vsel %vm71_vm0, %v572_v14, 0.0 }
 0x6e6   :  { %v567_v16 = vpop.xlane.xlu0 %566  ;;  %575 = vadd.xlane.f32.xlu2 %v574_v15 }
 0x6e7   :  { %v569_v17 = vmul.f32 %v567_v16, %v890_v59 }
 0x6e9   :  { %v571_v18 = vsub.f32 %v559_v10, %v569_v17 }
 0x6eb   :  { %v573_v19 = vmul.f32 %v571_v18, %v571_v18 }
 0x6ed   :  { %v577_v20 = vsel %vm71_vm0, %v573_v19, 0.0 }
 0x6ee   :  { %578 = vadd.xlane.f32.xlu0 %v577_v20 }
 0x759   :  { %v576_v21 = vpop.xlane.xlu2 %575 }
 0x75a   :  { %v580_v22 = vmul.f32 %v576_v21, %v890_v59 }
 0x75c   :  { %v582_v23 = vadd.f32 1e-12, %v580_v22 }
 0x75e   :  { %725 = vrsqrt.f32 %v582_v23  ;;  %vm590_vm14 = vweird.f32 %v582_v23 }
 0x761   :  { %v579_v24 = vpop.xlane.xlu0 %578 }
 0x762   :  { %v581_v25 = vmul.f32 %v579_v24, %v890_v59  ;;  %v698_v59 = vld [vmem:[%s964_s13] ss:$0 sm:$0xff] }
 0x764   :  { %v726_v26 = vpop.eup %725  ;;  %v583_v27 = vadd.f32 1e-12, %v581_v25 }
 0x765   :  { %v585_v28 = vmul.f32 %v726_v26, %v582_v23  ;;  %vm591_vm13 = vweird.f32 %v726_v26 }
 0x766   :  { %727 = vrsqrt.f32 %v583_v27  ;;  %vm592_vm15 = vmor %vm590_vm14, %vm591_vm13  ;;  %vm600_vm2 = vweird.f32 %v583_v27 }
 0x767   :  { %v586_v29 = vmul.f32 %v726_v26, %v585_v28 }
 0x769   :  { %v587_v30 = vmul.f32 0.5, %v586_v29 }
 0x76b   :  { %v588_v31 = vsub.f32 1.5, %v587_v30 }
 0x76c   :  { %v728_v32 = vpop.eup %727 }
 0x76d   :  { %v589_v33 = vmul.f32 %v726_v26, %v588_v31  ;;  %v595_v34 = vmul.f32 %v728_v32, %v583_v27  ;;  %vm601_vm1 = vweird.f32 %v728_v32 }
 0x76e   :  { %vm602_vm3 = vmor %vm600_vm2, %vm601_vm1 }
 0x76f   :  { %v593_v36 = vsel %vm592_vm15, %v726_v26, %v589_v33  ;;  %v596_v37 = vmul.f32 %v728_v32, %v595_v34 }
 0x770   :  { %v604_v38 = vmul.f32 %v593_v36, %v570_v13 }
 0x771   :  { %v597_v39 = vmul.f32 0.5, %v596_v37 }
 0x772   :  { %v609_v40 = vmul.f32 %v697_v35, %v604_v38 }
 0x773   :  { %v598_v41 = vsub.f32 1.5, %v597_v39 }
 0x774   :  { %v614_v42 = vadd.f32 %v698_v59, %v609_v40 }
 0x775   :  { %v599_v43 = vmul.f32 %v728_v32, %v598_v41 }
 0x776   :  { %616 = vst.msk [vmem:[%s965_s14] sm:$0xff] %vm71_vm0, %v614_v42 }
 0x777   :  { %v603_v44 = vsel %vm602_vm3, %v728_v32, %v599_v43 }
 0x778   :  { %v605_v45 = vmul.f32 %v603_v44, %v571_v18 }
 0x77a   :  { %v610_v46 = vmul.f32 %v697_v35, %v605_v45 }
 0x77c   :  { %v615_v47 = vadd.f32 %v698_v59, %v610_v46 }
 0x77e   :  { %617 = vst.msk [vmem:[%s965_s14 + $0x8] sm:$0xff] %vm71_vm0, %v615_v47 }

</bundles_post_ra>
